<compile_context>
chip_gen: v7x
topology: tpu7x:2x2x1
jax: 0.10.0
libtpu: 0.0.40
codegen_flags: <defaults>
</compile_context>

<pallas_src>
import jax
import jax.numpy as jnp
from jax.experimental import pallas as pl
from jax.experimental.pallas import tpu as pltpu

HIDDEN = 64


def qnetwork_kernel(x_ref, w1_ref, b1_ref, w2_ref, b2_ref, w3_ref, b3_ref, o_ref):
    # Cast the f32 x tile to bf16 in-kernel (free VPU work; avoids a wrapper HBM pass).
    x = x_ref[...].astype(jnp.bfloat16)
    # Layer 1: Linear(state_dim, 64) + ReLU   (bf16 operands, f32 MXU accumulate)
    h1 = jnp.dot(x, w1_ref[...], preferred_element_type=jnp.float32)
    h1 = jnp.maximum(h1 + b1_ref[...], 0.0)
    # Layer 2: Linear(64, 64) + ReLU
    h2 = jnp.dot(h1.astype(w2_ref.dtype), w2_ref[...],
                 preferred_element_type=jnp.float32)
    h2 = jnp.maximum(h2 + b2_ref[...], 0.0)
    # Layer 3: Linear(64, action_dim), no activation
    out = jnp.dot(h2.astype(w3_ref.dtype), w3_ref[...],
                  preferred_element_type=jnp.float32)
    o_ref[...] = (out + b3_ref[...]).astype(o_ref.dtype)


def _round_up(x, m):
    return (x + m - 1) // m * m


def qnetwork_forward(x, params, *, tb_max=2048, target_steps=8):
    """x: (B, state_dim) f32. params: w1,b1,w2,b2,w3,b3 with weights stored as (in, out)."""
    w1, b1, w2, b2, w3, b3 = (params[k] for k in ("w1", "b1", "w2", "b2", "w3", "b3"))
    B, state_dim = x.shape
    action_dim = w3.shape[1]

    # x stays f32 (bf16 cast happens inside the kernel); weights bf16, biases f32.
    x_f = x.astype(jnp.float32)
    w1_bf, w2_bf, w3_bf = (w.astype(jnp.bfloat16) for w in (w1, w2, w3))
    b1_f, b2_f, b3_f = (b.astype(jnp.float32) for b in (b1, b2, b3))

    # Pad the batch only to a multiple of 16 (<= 15 zero rows), never to a multiple of TB.
    B_pad = _round_up(B, 16)
    if B_pad != B:
        x_f = jnp.pad(x_f, ((0, B_pad - B), (0, 0)))

    # Batch tile: aim for ~target_steps grid steps so (a) v7x's second TensorCore gets
    # work via the "parallel" grid axis and (b) the x DMA of step i+1 overlaps compute
    # of step i. Capped at tb_max; multiple of 16 for sublane packing.
    TB = max(16, min(tb_max, B_pad, _round_up(pl.cdiv(B_pad, target_steps), 16)))
    grid = (pl.cdiv(B_pad, TB),)  # a non-dividing last tile is masked by Pallas

    # Weights/biases: whole-array blocks with constant index_map -> VMEM-resident
    # across the whole grid (no re-DMA per step).
    pinned = lambda a: pl.BlockSpec(a.shape, lambda i: (0, 0))

    flops = 2 * B_pad * (state_dim * HIDDEN + HIDDEN * HIDDEN + HIDDEN * action_dim)
    weight_bytes = sum(a.size * a.dtype.itemsize
                       for a in (w1_bf, w2_bf, w3_bf, b1_f, b2_f, b3_f))
    bytes_accessed = (x_f.size * x_f.dtype.itemsize + weight_bytes
                      + B_pad * action_dim * 4)

    # VMEM budget from actual buffers: double-buffered x/out tiles, pinned weights,
    # f32 h1/h2 temps + in-kernel bf16 casts, plus slack for Mosaic scratch.
    vmem_need = (2 * TB * (state_dim + action_dim) * 4      # x/out tiles, double-buffered
                 + 2 * TB * HIDDEN * 4                      # f32 h1, h2
                 + TB * (state_dim + 2 * HIDDEN) * 2        # bf16 casts of x, h1, h2
                 + 2 * weight_bytes
                 + (4 << 20))
    vmem_limit = int(min(max(vmem_need, 16 << 20), 64 << 20))

    out = pl.pallas_call(
        qnetwork_kernel,
        out_shape=jax.ShapeDtypeStruct((B_pad, action_dim), jnp.float32),
        grid=grid,
        in_specs=[
            pl.BlockSpec((TB, state_dim), lambda i: (i, 0)),   # x: tiled over batch
            pinned(w1_bf), pinned(b1_f),
            pinned(w2_bf), pinned(b2_f),
            pinned(w3_bf), pinned(b3_f),
        ],
        out_specs=pl.BlockSpec((TB, action_dim), lambda i: (i, 0)),
        compiler_params=pltpu.CompilerParams(
            dimension_semantics=("parallel",),   # shard batch tiles across v7x TCs
            vmem_limit_bytes=vmem_limit,
        ),
        cost_estimate=pl.CostEstimate(
            flops=flops, transcendentals=0, bytes_accessed=bytes_accessed),
    )(x_f, w1_bf, b1_f, w2_bf, b2_f, w3_bf, b3_f)

    return out[:B] if B_pad != B else out


def init_params(key, state_dim, action_dim, hidden=HIDDEN):
    """PyTorch nn.Linear default init: U[-1/sqrt(fan_in), 1/sqrt(fan_in)]."""
    ks = jax.random.split(key, 6)

    def lin(kw, kb, fan_in, fan_out):
        bound = 1.0 / jnp.sqrt(fan_in)
        w = jax.random.uniform(kw, (fan_in, fan_out), jnp.float32, -bound, bound)
        b = jax.random.uniform(kb, (1, fan_out), jnp.float32, -bound, bound)
        return w, b

    w1, b1 = lin(ks[0], ks[1], state_dim, hidden)
    w2, b2 = lin(ks[2], ks[3], hidden, hidden)
    w3, b3 = lin(ks[4], ks[5], hidden, action_dim)
    return {"w1": w1, "b1": b1, "w2": w2, "b2": b2, "w3": w3, "b3": b3}


def reference_forward_f32(x, p):
    h1 = jnp.maximum(x @ p["w1"] + p["b1"], 0.0)
    h2 = jnp.maximum(h1 @ p["w2"] + p["b2"], 0.0)
    return h2 @ p["w3"] + p["b3"]


def reference_forward_bf16(x, p):
    """Matches the kernel's precision policy (bf16 operands, f32 accumulate/epilogue)."""
    bf = jnp.bfloat16
    h1 = jnp.maximum(
        jnp.dot(x.astype(bf), p["w1"].astype(bf),
                preferred_element_type=jnp.float32) + p["b1"], 0.0)
    h2 = jnp.maximum(
        jnp.dot(h1.astype(bf), p["w2"].astype(bf),
                preferred_element_type=jnp.float32) + p["b2"], 0.0)
    return jnp.dot(h2.astype(bf), p["w3"].astype(bf),
                   preferred_element_type=jnp.float32) + p["b3"]


if __name__ == "__main__":
    key = jax.random.PRNGKey(0)
    k_x, k_x2, k_x3, k_p = jax.random.split(key, 4)

    batch, state_dim, action_dim = 8, 16, 4
    x = jax.random.normal(k_x, (batch, state_dim), jnp.float32)
    params = init_params(k_p, state_dim, action_dim)

    out = jax.block_until_ready(qnetwork_forward(x, params))
    assert out.shape == (batch, action_dim)
    # Matching-precision reference (tight) and pure-f32 reference (bf16 tolerance).
    assert jnp.allclose(out, reference_forward_bf16(x, params), atol=1e-4, rtol=1e-4)
    assert jnp.allclose(out, reference_forward_f32(x, params), atol=5e-2, rtol=5e-2)

    # Non-multiple batch size exercises the pad-to-16 + multi-step (grid=3) path.
    x2 = jax.random.normal(k_x2, (37, state_dim), jnp.float32)
    out2 = jax.block_until_ready(qnetwork_forward(x2, params))
    assert out2.shape == (37, action_dim)
    assert jnp.allclose(out2, reference_forward_bf16(x2, params), atol=1e-4, rtol=1e-4)

    # Larger batch exercises a multi-step grid (grid=5, TB=32) with no padding at all.
    x3 = jax.random.normal(k_x3, (160, state_dim), jnp.float32)
    out3 = jax.block_until_ready(qnetwork_forward(x3, params))
    assert out3.shape == (160, action_dim)
    assert jnp.allclose(out3, reference_forward_bf16(x3, params), atol=1e-4, rtol=1e-4)

    print("KERNEL_OK")
</pallas_src>

<mosaic_0001>
module attributes {stable_mosaic.version = 11 : i64} {
  func.func @qnetwork_kernel(%arg0: i32, %arg1: memref<16x16xf32, #tpu.memory_space<vmem>>, %arg2: memref<16x64xbf16, #tpu.memory_space<vmem>>, %arg3: memref<1x64xf32, #tpu.memory_space<vmem>>, %arg4: memref<64x64xbf16, #tpu.memory_space<vmem>>, %arg5: memref<1x64xf32, #tpu.memory_space<vmem>>, %arg6: memref<64x4xbf16, #tpu.memory_space<vmem>>, %arg7: memref<1x4xf32, #tpu.memory_space<vmem>>, %arg8: memref<16x4xf32, #tpu.memory_space<vmem>>) attributes {dimension_semantics = [#tpu.dimension_semantics<parallel>], iteration_bounds = array<i64: 1>, scalar_prefetch = 0 : i64, scratch_operands = 0 : i64, tpu.core_type = #tpu.core_type<tc>, window_params = [{transform_indices = @transform_0, window_bounds = array<i64: 16, 16>}, {pipeline_mode = #tpu.pipeline_mode<synchronous>, transform_indices = @transform_1, window_bounds = array<i64: 16, 64>}, {pipeline_mode = #tpu.pipeline_mode<synchronous>, transform_indices = @transform_2, window_bounds = array<i64: 1, 64>}, {pipeline_mode = #tpu.pipeline_mode<synchronous>, transform_indices = @transform_3, window_bounds = array<i64: 64, 64>}, {pipeline_mode = #tpu.pipeline_mode<synchronous>, transform_indices = @transform_4, window_bounds = array<i64: 1, 64>}, {pipeline_mode = #tpu.pipeline_mode<synchronous>, transform_indices = @transform_5, window_bounds = array<i64: 64, 4>}, {pipeline_mode = #tpu.pipeline_mode<synchronous>, transform_indices = @transform_6, window_bounds = array<i64: 1, 4>}, {transform_indices = @transform_7, window_bounds = array<i64: 16, 4>}]} {
    %c0 = arith.constant 0 : index
    %c0_0 = arith.constant 0 : index
    %0 = vector.load %arg1[%c0, %c0_0] : memref<16x16xf32, #tpu.memory_space<vmem>>, vector<16x16xf32>
    %1 = arith.truncf %0 : vector<16x16xf32> to vector<16x16xbf16>
    %c0_1 = arith.constant 0 : index
    %c0_2 = arith.constant 0 : index
    %2 = vector.load %arg2[%c0_1, %c0_2] : memref<16x64xbf16, #tpu.memory_space<vmem>>, vector<16x64xbf16>
    %cst = arith.constant dense<0.000000e+00> : vector<16x64xf32>
    %3 = tpu.matmul %1, %2, %cst {dimension_numbers = #tpu.dot_dimension_numbers<[1], [0], [0], [1], [0, 0, 1, 1], [], []>} : vector<16x16xbf16>, vector<16x64xbf16>, vector<16x64xf32> -> vector<16x64xf32>
    %c0_3 = arith.constant 0 : index
    %c0_4 = arith.constant 0 : index
    %4 = vector.load %arg3[%c0_3, %c0_4] : memref<1x64xf32, #tpu.memory_space<vmem>>, vector<1x64xf32>
    %5 = vector.broadcast %4 : vector<1x64xf32> to vector<16x64xf32>
    %6 = arith.addf %3, %5 : vector<16x64xf32>
    %cst_5 = arith.constant 0.000000e+00 : f32
    %7 = vector.broadcast %cst_5 : f32 to vector<16x64xf32>
    %8 = arith.maximumf %6, %7 : vector<16x64xf32>
    %9 = arith.truncf %8 : vector<16x64xf32> to vector<16x64xbf16>
    %c0_6 = arith.constant 0 : index
    %c0_7 = arith.constant 0 : index
    %10 = vector.load %arg4[%c0_6, %c0_7] : memref<64x64xbf16, #tpu.memory_space<vmem>>, vector<64x64xbf16>
    %cst_8 = arith.constant dense<0.000000e+00> : vector<16x64xf32>
    %11 = tpu.matmul %9, %10, %cst_8 {dimension_numbers = #tpu.dot_dimension_numbers<[1], [0], [0], [1], [0, 0, 1, 1], [], []>} : vector<16x64xbf16>, vector<64x64xbf16>, vector<16x64xf32> -> vector<16x64xf32>
    %c0_9 = arith.constant 0 : index
    %c0_10 = arith.constant 0 : index
    %12 = vector.load %arg5[%c0_9, %c0_10] : memref<1x64xf32, #tpu.memory_space<vmem>>, vector<1x64xf32>
    %13 = vector.broadcast %12 : vector<1x64xf32> to vector<16x64xf32>
    %14 = arith.addf %11, %13 : vector<16x64xf32>
    %cst_11 = arith.constant 0.000000e+00 : f32
    %15 = vector.broadcast %cst_11 : f32 to vector<16x64xf32>
    %16 = arith.maximumf %14, %15 : vector<16x64xf32>
    %17 = arith.truncf %16 : vector<16x64xf32> to vector<16x64xbf16>
    %c0_12 = arith.constant 0 : index
    %c0_13 = arith.constant 0 : index
    %18 = vector.load %arg6[%c0_12, %c0_13] : memref<64x4xbf16, #tpu.memory_space<vmem>>, vector<64x4xbf16>
    %cst_14 = arith.constant dense<0.000000e+00> : vector<16x4xf32>
    %19 = tpu.matmul %17, %18, %cst_14 {dimension_numbers = #tpu.dot_dimension_numbers<[1], [0], [0], [1], [0, 0, 1, 1], [], []>} : vector<16x64xbf16>, vector<64x4xbf16>, vector<16x4xf32> -> vector<16x4xf32>
    %c0_15 = arith.constant 0 : index
    %c0_16 = arith.constant 0 : index
    %20 = vector.load %arg7[%c0_15, %c0_16] : memref<1x4xf32, #tpu.memory_space<vmem>>, vector<1x4xf32>
    %21 = vector.broadcast %20 : vector<1x4xf32> to vector<16x4xf32>
    %22 = arith.addf %19, %21 : vector<16x4xf32>
    %c0_17 = arith.constant 0 : index
    %c0_18 = arith.constant 0 : index
    %23 = vector.load %arg8[%c0_17, %c0_18] : memref<16x4xf32, #tpu.memory_space<vmem>>, vector<16x4xf32>
    tpu.vector_store %arg8[%c0_17, %c0_18], %22 {strides = array<i32>} : memref<16x4xf32, #tpu.memory_space<vmem>>, vector<16x4xf32>,
    return
  }
  func.func @transform_0(%arg0: i32) -> (i32, i32) {
    %c0_i32 = arith.constant 0 : i32
    %c0_i32_0 = arith.constant 0 : i32
    return %arg0, %c0_i32 : i32, i32
  }
  func.func @transform_1(%arg0: i32) -> (i32, i32) {
    %c0_i32 = arith.constant 0 : i32
    %c0_i32_0 = arith.constant 0 : i32
    %c0_i32_1 = arith.constant 0 : i32
    return %c0_i32, %c0_i32_0 : i32, i32
  }
  func.func @transform_2(%arg0: i32) -> (i32, i32) {
    %c0_i32 = arith.constant 0 : i32
    %c0_i32_0 = arith.constant 0 : i32
    %c0_i32_1 = arith.constant 0 : i32
    return %c0_i32, %c0_i32_0 : i32, i32
  }
  func.func @transform_3(%arg0: i32) -> (i32, i32) {
    %c0_i32 = arith.constant 0 : i32
    %c0_i32_0 = arith.constant 0 : i32
    %c0_i32_1 = arith.constant 0 : i32
    return %c0_i32, %c0_i32_0 : i32, i32
  }
  func.func @transform_4(%arg0: i32) -> (i32, i32) {
    %c0_i32 = arith.constant 0 : i32
    %c0_i32_0 = arith.constant 0 : i32
    %c0_i32_1 = arith.constant 0 : i32
    return %c0_i32, %c0_i32_0 : i32, i32
  }
  func.func @transform_5(%arg0: i32) -> (i32, i32) {
    %c0_i32 = arith.constant 0 : i32
    %c0_i32_0 = arith.constant 0 : i32
    %c0_i32_1 = arith.constant 0 : i32
    return %c0_i32, %c0_i32_0 : i32, i32
  }
  func.func @transform_6(%arg0: i32) -> (i32, i32) {
    %c0_i32 = arith.constant 0 : i32
    %c0_i32_0 = arith.constant 0 : i32
    %c0_i32_1 = arith.constant 0 : i32
    return %c0_i32, %c0_i32_0 : i32, i32
  }
  func.func @transform_7(%arg0: i32) -> (i32, i32) {
    %c0_i32 = arith.constant 0 : i32
    %c0_i32_0 = arith.constant 0 : i32
    return %arg0, %c0_i32 : i32, i32
  }
}

</mosaic_0001>

<bundles_post_ra>
// kernel: tpu_custom_call.1
= control target key start
LH: loop header
LB: loop body
LE: loop exit
PB: predicated region body
PF: predicated region fallthrough
CT: control target
= control target key end

     0   :  { %12 = vsyncpa [#allocation3], 0  ;;  %s380_s24 = smov [#allocation2]   ;;  %s484_s0 = inlined_call_operand.hbm [shape: f32[16,16], index: 0, kind: input, shape index: {}]   ;;  %s485_s1 = inlined_call_operand.vmem [shape: bf16[16,64], index: 1, kind: input, shape index: {}]   ;;  %s486_s2 = inlined_call_operand.vmem [shape: f32[1,64], index: 2, kind: input, shape index: {}]   ;;  %s487_s3 = inlined_call_operand.vmem [shape: bf16[64,64], index: 3, kind: input, shape index: {}]   ;;  %s488_s4 = inlined_call_operand.vmem [shape: f32[1,64], index: 4, kind: input, shape index: {}]   ;;  %s489_s5 = inlined_call_operand.vmem [shape: bf16[64,4], index: 5, kind: input, shape index: {}]   ;;  %s490_s6 = inlined_call_operand.vmem [shape: f32[1,4], index: 6, kind: input, shape index: {}]   ;;  %s491_s7 = inlined_call_operand.vmem [shape: f32[16,4], index: 7, kind: output, shape index: {}]  }
   0x1   :  { %s18_s25 = sshll.u32 %s380_s24, 4  ;;  %s356_s28 = scalar_lea.hbm %s484_s0, 256  ;;  %s19_s25 = int_to_ptr.vmem [resolvable:$true] %s18_s25 }
   0x2   :  { %p357_p0 = scmp.ne.s32.totalorder %s484_s0, %s356_s28  ;;  %p360_p1 = scmp.lt.u32.totalorder %s356_s28, %s484_s0 }
   0x4   :  { %p362_p2 = pnand %p360_p1, %p357_p0 }
   0x6   :  { %365 = shalt.err (!%p362_p2)
}
   0x7   :  { %s366_s10 = scalar_lea.vmem %s19_s25, 256  ;;  %p371_p4 = scmp.lt.s32.totalorder %s19_s25, %s19_s25 }
   0x8   :  { %p367_p3 = scmp.ne.s32.totalorder %s19_s25, %s366_s10  ;;  %p372_p5 = scmp.lt.s32.totalorder %s366_s10, %s366_s10 }
   0xa   :  { %p373_p6 = por %p372_p5, %p371_p4 }
   0xc   :  { %p374_p7 = pnand %p373_p6, %p367_p3 }
   0xe   :  { %377 = shalt.err (!%p374_p7)
}
   0xf   :  { %s381_s11 = smov 128   ;;  %s382_s12 = smov 8  }
  0x10   :  { %24 = dma.hbm_to_vmem [thread:$0]  %s484_s0, 256, %s19_s25, [#allocation3], %s381_s11, %s381_s11, %s382_s12  }
  0x11   :  { %378 = dma.done.wait [#allocation3], 256  }
  0x12   :  { %379 = vsyncadd [#allocation3], 4294967040  ;;  %v383_v0 = vmov 0.0   ;;  %vm384_vm0 = vmmov 0   ;;  %v347_v1 = vld [vmem:[%s485_s1] sm:$0xff]   ;;  %v42_v3 = vld [vmem:[#allocation2 + $0x8] sm:$0xff] }
  0x13   :  { %312 = vmatprep.subr.bf16.mxu0 %v383_v0  ;;  %314 = vmatprep.mubr.msk.bf16.mxu0 %vm384_vm0, %v383_v0  ;;  %v41_v2 = vld [vmem:[#allocation2] sm:$0xff]  ;;  %vm59_vm1 = vcmask 130048   ;;  %v349_v6 = vld [vmem:[%s487_s3 + $0x8] sm:$0xff]   ;;  %v350_v7 = vld [vmem:[%s487_s3 + $0x10] sm:$0xff]   ;;  %vm146_vm2 = vcmask 523264   ;;  %vm277_vm3 = vcmask 31744  }
  0x14   :  { %318 = vmatprep.subr.bf16.mxu1 %v383_v0  ;;  %326 = vmatprep.mubr.msk.bf16.mxu1 %vm384_vm0, %v383_v0  ;;  %v43_v4 = vpack.c.bf16 %v42_v3, %v41_v2  ;;  %v348_v5 = vld [vmem:[%s487_s3] sm:$0xff]   ;;  %v351_v8 = vld [vmem:[%s487_s3 + $0x18] sm:$0xff]   ;;  %v353_v10 = vld [vmem:[%s489_s5 + $0x8] sm:$0xff]  }
  0x15   :  { %313 = vmatpush3.bf16.msra.mxu0 %v347_v1  ;;  %319 = vmatpush3.bf16.msra.mxu1 %v348_v5  ;;  %v352_v9 = vld [vmem:[%s489_s5] sm:$0xff]   ;;  %v354_v21 = vld [vmem:[%s489_s5 + $0x10] sm:$0xff]   ;;  %v355_v22 = vld [vmem:[%s489_s5 + $0x18] sm:$0xff]  }
  0x16   :  { %330 = vmatprep.subr.bf16.mxu0 %v383_v0  ;;  %320 = vmatprep.subr.bf16.mxu1 %v383_v0  ;;  %v285_v11 = vld [vmem:[%s486_s2] ss:$0 sm:$0xff] }
  0x17   :  { %v288_v23 = vld [vmem:[%s488_s4] ss:$0 sm:$0xff] }
  0x18   :  { %315 = vmatmul.mubr.msk.bf16.vlgmr.msra.gmra.mrb[0].mxu0 %vm59_vm1, %v43_v4  ;;  %v294_v33 = vld [vmem:[%s490_s6] ss:$0 sm:$0xff] }
  0x19   :  { %338 = vmatprep.mubr.msk.bf16.mxu0 %vm384_vm0, %v383_v0  ;;  %321 = vmatpush3.bf16.msra.mxu1 %v349_v6 }
  0x1a   :  { %322 = vmatprep.subr.bf16.mxu1 %v383_v0  ;;  %331 = vmatpush3.bf16.msra.mxu0 %v352_v9 }
  0x1b   :  { %332 = vmatprep.subr.bf16.mxu0 %v383_v0 }
  0x1d   :  { %323 = vmatpush3.bf16.msra.mxu1 %v350_v7 }
  0x1e   :  { %324 = vmatprep.subr.bf16.mxu1 %v383_v0  ;;  %333 = vmatpush3.bf16.msra.mxu0 %v353_v10 }
  0x1f   :  { %334 = vmatprep.subr.bf16.mxu0 %v383_v0 }
  0x21   :  { %325 = vmatpush3.bf16.msra.mxu1 %v351_v8 }
  0x22   :  { %335 = vmatpush3.bf16.msra.mxu0 %v354_v21 }
  0x23   :  { %336 = vmatprep.subr.bf16.mxu0 %v383_v0 }
  0x26   :  { %337 = vmatpush3.bf16.msra.mxu0 %v355_v22 }
  0xeb   :  { %v97_v12 = vpop.f32.mrb[0].mxu0 }
  0xec   :  { %v98_v13 = vadd.f32 %v285_v11, %v97_v12  ;;  %v316_v14 = vpop.f32.mrb[1].mxu0 }
  0xed   :  { %v100_v15 = vpop.f32.mrb[2].mxu0 }
  0xee   :  { %v101_v16 = vadd.f32 %v285_v11, %v100_v15  ;;  %v317_v17 = vpop.f32.mrb[3].mxu0  ;;  %v104_v18 = vmax.f32 %v98_v13, 0.0 }
  0xf0   :  { %v105_v19 = vmax.f32 %v101_v16, 0.0 }
  0xf2   :  { %v106_v20 = vpack.c.bf16 %v105_v19, %v104_v18 }
  0xf4   :  { %327 = vmatmul.mubr.msk.bf16.vlgmr.msra.gmra.mrb[0].mxu1 %vm146_vm2, %v106_v20 }
 0x1c7   :  { %v184_v24 = vpop.f32.mrb[0].mxu1 }
 0x1c8   :  { %v185_v25 = vadd.f32 %v288_v23, %v184_v24  ;;  %v328_v26 = vpop.f32.mrb[1].mxu1 }
 0x1c9   :  { %v187_v27 = vpop.f32.mrb[2].mxu1 }
 0x1ca   :  { %v188_v28 = vadd.f32 %v288_v23, %v187_v27  ;;  %v329_v29 = vpop.f32.mrb[3].mxu1  ;;  %v191_v30 = vmax.f32 %v185_v25, 0.0 }
 0x1cc   :  { %v192_v31 = vmax.f32 %v188_v28, 0.0 }
 0x1ce   :  { %v193_v32 = vpack.c.bf16 %v192_v31, %v191_v30 }
 0x1d0   :  { %339 = vmatmul.mubr.msk.bf16.vlgmr.msra.gmra.mrb[4].mxu0 %vm146_vm2, %v193_v32 }
 0x2a3   :  { %v270_v34 = vpop.f32.mrb[4].mxu0 }
 0x2a4   :  { %v271_v35 = vadd.f32 %v294_v33, %v270_v34  ;;  %v340_v36 = vpop.f32.mrb[5].mxu0 }
 0x2a5   :  { %v273_v37 = vpop.f32.mrb[6].mxu0 }
 0x2a6   :  { %278 = vst.msk [vmem:[%s491_s7] sm:$0xff] %vm277_vm3, %v271_v35  ;;  %v274_v38 = vadd.f32 %v294_v33, %v273_v37  ;;  %v341_v39 = vpop.f32.mrb[7].mxu0 }
 0x2a8   :  { %279 = vst.msk [vmem:[%s491_s7 + $0x8] sm:$0xff] %vm277_vm3, %v274_v38 }
 0x2a9   :  { %284 = vsyncpa [#allocation3], 1 }

</bundles_post_ra>
